<compile_context>
chip_gen: v7x
topology: tpu7x:2x2x1
jax: 0.10.0
libtpu: 0.0.40
codegen_flags: <defaults>
</compile_context>

<pallas_src>
import functools

import jax
import jax.numpy as jnp
from jax.experimental import pallas as pl
from jax.experimental.pallas import tpu as pltpu


def _round_up(x, m):
    return (x + m - 1) // m * m


def _multilabel_encoder_kernel(y_ref, tab_ref, out_ref, *, offsets):
    # y_ref:   (TB, L)               int32  VMEM
    # tab_ref: (Vtot_pad, d_out_pad) f32    VMEM (packed / block-diagonal tables)
    # out_ref: (TB, d_out_pad)       f32    VMEM
    tb = y_ref.shape[0]
    vtot = tab_ref.shape[0]
    y = y_ref[...]                                                    # (TB, L)

    # Single hoisted iota; L cheap VPU compares on one lane-dense buffer.
    iota = jax.lax.broadcasted_iota(jnp.int32, (tb, vtot), 1)         # (TB, Vtot_pad)
    onehot = None
    for l, off in enumerate(offsets):                                 # L tiny & static -> unrolled
        hit = iota == (y[:, l:l + 1] + off)                           # (TB, Vtot_pad) bool
        onehot = hit if onehot is None else jnp.logical_or(onehot, hit)
    onehot = onehot.astype(jnp.float32)

    # One fused MXU matmul -> full (TB, d_out_pad) row, one lane-dense store.
    out_ref[...] = jnp.dot(onehot, tab_ref[...],
                           preferred_element_type=jnp.float32)


def make_multilabel_encoder(num_class_per_label, d_latent, interaction):
    """Returns (tables, apply_fn) mirroring MultiLabelEncoder.__init__/forward."""
    if interaction not in ('cat', 'sum'):
        raise ValueError(
            f"interaction must be either 'cat' or 'sum' not {interaction}")
    num_labels = len(num_class_per_label)
    if interaction == 'cat':
        if d_latent % num_labels != 0:
            raise ValueError(
                f'd_latent {d_latent} must be divisible by '
                f'len(num_class_per_label) {num_labels}')
        d_per = d_latent // num_labels
    else:
        d_per = d_latent
    d_out = d_latent

    # Deterministic init (nn.Embedding default: N(0, 1)).
    key = jax.random.PRNGKey(0)
    keys = jax.random.split(key, num_labels)
    vocab_sizes = [nc + 1 for nc in num_class_per_label]
    tables = [jax.random.normal(keys[i], (v, d_per), jnp.float32)
              for i, v in enumerate(vocab_sizes)]

    # Pack tables at their TRUE vocab sizes (no per-label Vmax padding): rows
    # [off_l, off_l + V_l) hold table l.  For 'cat' the packing is
    # block-diagonal in the column dimension so one matmul directly yields the
    # concatenation; for 'sum' all tables share the same columns so one matmul
    # yields the sum.
    offsets = []
    row = 0
    for v in vocab_sizes:
        offsets.append(row)
        row += v
    vtot = row
    vtot_pad = _round_up(max(vtot, 8), 128)        # lane dim of the one-hot
    d_out_pad = _round_up(max(d_out, 128), 128)    # lane-dense output stores

    packed = jnp.zeros((vtot_pad, d_out_pad), jnp.float32)
    for l, t in enumerate(tables):
        col = l * d_per if interaction == 'cat' else 0
        packed = packed.at[offsets[l]:offsets[l] + t.shape[0],
                           col:col + d_per].set(t)

    kernel = functools.partial(_multilabel_encoder_kernel, offsets=tuple(offsets))
    tab_bytes = vtot_pad * d_out_pad * 4
    # TODO(synk): if the packed table ever exceeds the 64 MiB v7x VMEM budget,
    # keep it HBM-resident (memory_space=pl.ANY) and tile the vocab axis.

    def apply_fn(y):
        B = y.shape[0]
        # Batch tile: multiple of 8 sublanes, capped so large batches pipeline
        # across the grid (and shard across TCs via the 'parallel' axis).
        TB = min(512, _round_up(B, 8))
        B_pad = _round_up(B, TB)
        y_p = jnp.pad(y.astype(jnp.int32), ((0, B_pad - B), (0, 0)))

        vmem_need = (2 * tab_bytes                                   # resident table (+slack)
                     + 2 * TB * (num_labels + d_out_pad) * 4          # double-buffered y / out
                     + TB * vtot_pad * 4                              # onehot temp
                     + (2 << 20))                                     # headroom
        vmem_limit = int(min(max(vmem_need, 32 << 20), 64 << 20))

        out = pl.pallas_call(
            kernel,
            out_shape=jax.ShapeDtypeStruct((B_pad, d_out_pad), jnp.float32),
            grid=(B_pad // TB,),
            in_specs=[
                pl.BlockSpec((TB, num_labels), lambda i: (i, 0)),       # y tile
                pl.BlockSpec((vtot_pad, d_out_pad), lambda i: (0, 0)),  # resident table
            ],
            out_specs=pl.BlockSpec((TB, d_out_pad), lambda i: (i, 0)),
            compiler_params=pltpu.CompilerParams(
                dimension_semantics=("parallel",),
                vmem_limit_bytes=vmem_limit),
            cost_estimate=pl.CostEstimate(
                flops=2 * B_pad * vtot_pad * d_out_pad,
                transcendentals=0,
                bytes_accessed=int(y_p.size * 4 + packed.size * 4
                                   + B_pad * d_out_pad * 4)),
        )(y_p, packed)
        return out[:B, :d_out]

    return tables, apply_fn


def _reference(tables, y, interaction):
    embs = [jnp.take(t, y[:, i], axis=0) for i, t in enumerate(tables)]
    if interaction == 'cat':
        return jnp.concatenate(embs, axis=1)
    return functools.reduce(lambda a, b: a + b, embs)


if __name__ == "__main__":
    B = 8
    num_class_per_label = (10, 7)   # two labels with different vocab sizes
    d_latent = 32

    key = jax.random.PRNGKey(0)
    k0, k1 = jax.random.split(key)
    y = jnp.stack(
        [jax.random.randint(k0, (B,), 0, num_class_per_label[0] + 1),
         jax.random.randint(k1, (B,), 0, num_class_per_label[1] + 1)],
        axis=1).astype(jnp.int32)  # (B, 2)

    ok = True
    for interaction in ('cat', 'sum'):
        tables, apply_fn = make_multilabel_encoder(
            num_class_per_label, d_latent, interaction)
        out = jax.block_until_ready(apply_fn(y))
        ref = _reference(tables, y, interaction)
        ok = ok and bool(jnp.allclose(out, ref, atol=1e-5, rtol=1e-5))
        ok = ok and out.shape == (B, d_latent)

    if ok:
        print("KERNEL_OK")
    else:
        raise SystemExit("mismatch vs reference")
</pallas_src>

<mosaic_0001>
module attributes {stable_mosaic.version = 11 : i64} {
  func.func @_multilabel_encoder_kernel(%arg0: i32, %arg1: memref<8x2xi32, #tpu.memory_space<vmem>>, %arg2: memref<128x128xf32, #tpu.memory_space<vmem>>, %arg3: memref<8x128xf32, #tpu.memory_space<vmem>>) attributes {dimension_semantics = [#tpu.dimension_semantics<parallel>], iteration_bounds = array<i64: 1>, scalar_prefetch = 0 : i64, scratch_operands = 0 : i64, tpu.core_type = #tpu.core_type<tc>, window_params = [{transform_indices = @transform_0, window_bounds = array<i64: 8, 2>}, {pipeline_mode = #tpu.pipeline_mode<synchronous>, transform_indices = @transform_1, window_bounds = array<i64: 128, 128>}, {transform_indices = @transform_2, window_bounds = array<i64: 8, 128>}]} {
    %c0 = arith.constant 0 : index
    %c0_0 = arith.constant 0 : index
    %0 = vector.load %arg1[%c0, %c0_0] : memref<8x2xi32, #tpu.memory_space<vmem>>, vector<8x2xi32>
    %1 = tpu.iota {dimensions = array<i32: 1>} : vector<8x128xi32>
    %2 = vector.extract_strided_slice %0 {offsets = [0, 0], sizes = [8, 1], strides = [1, 1]} : vector<8x2xi32> to vector<8x1xi32>
    %c0_i32 = arith.constant 0 : i32
    %3 = vector.broadcast %c0_i32 : i32 to vector<8x1xi32>
    %4 = arith.addi %2, %3 : vector<8x1xi32>
    %5 = vector.broadcast %4 : vector<8x1xi32> to vector<8x128xi32>
    %6 = arith.cmpi eq, %1, %5 : vector<8x128xi32>
    %7 = vector.extract_strided_slice %0 {offsets = [0, 1], sizes = [8, 1], strides = [1, 1]} : vector<8x2xi32> to vector<8x1xi32>
    %c11_i32 = arith.constant 11 : i32
    %8 = vector.broadcast %c11_i32 : i32 to vector<8x1xi32>
    %9 = arith.addi %7, %8 : vector<8x1xi32>
    %10 = vector.broadcast %9 : vector<8x1xi32> to vector<8x128xi32>
    %11 = arith.cmpi eq, %1, %10 : vector<8x128xi32>
    %12 = arith.ori %6, %11 : vector<8x128xi1>
    %13 = arith.extui %12 : vector<8x128xi1> to vector<8x128xi32>
    %14 = arith.sitofp %13 : vector<8x128xi32> to vector<8x128xf32>
    %c0_1 = arith.constant 0 : index
    %c0_2 = arith.constant 0 : index
    %15 = vector.load %arg2[%c0_1, %c0_2] : memref<128x128xf32, #tpu.memory_space<vmem>>, vector<128x128xf32>
    %cst = arith.constant dense<0.000000e+00> : vector<8x128xf32>
    %16 = tpu.matmul %14, %15, %cst {dimension_numbers = #tpu.dot_dimension_numbers<[1], [0], [0], [1], [0, 0, 1, 1], [], []>} : vector<8x128xf32>, vector<128x128xf32>, vector<8x128xf32> -> vector<8x128xf32>
    %c0_3 = arith.constant 0 : index
    %c0_4 = arith.constant 0 : index
    %17 = vector.load %arg3[%c0_3, %c0_4] : memref<8x128xf32, #tpu.memory_space<vmem>>, vector<8x128xf32>
    tpu.vector_store %arg3[%c0_3, %c0_4], %16 {strides = array<i32>} : memref<8x128xf32, #tpu.memory_space<vmem>>, vector<8x128xf32>,
    return
  }
  func.func @transform_0(%arg0: i32) -> (i32, i32) {
    %c0_i32 = arith.constant 0 : i32
    %c0_i32_0 = arith.constant 0 : i32
    return %arg0, %c0_i32 : i32, i32
  }
  func.func @transform_1(%arg0: i32) -> (i32, i32) {
    %c0_i32 = arith.constant 0 : i32
    %c0_i32_0 = arith.constant 0 : i32
    %c0_i32_1 = arith.constant 0 : i32
    return %c0_i32, %c0_i32_0 : i32, i32
  }
  func.func @transform_2(%arg0: i32) -> (i32, i32) {
    %c0_i32 = arith.constant 0 : i32
    %c0_i32_0 = arith.constant 0 : i32
    return %arg0, %c0_i32 : i32, i32
  }
}

</mosaic_0001>

<bundles_post_ra>
// kernel: tpu_custom_call.1
= control target key start
LH: loop header
LB: loop body
LE: loop exit
PB: predicated region body
PF: predicated region fallthrough
CT: control target
= control target key end

     0   :  { %7 = vsyncpa [#allocation3], 0  ;;  %s333_s0 = inlined_call_operand.vmem [shape: s32[8,2], index: 0, kind: input, shape index: {}]   ;;  %s334_s1 = inlined_call_operand.hbm [shape: f32[128,128], index: 1, kind: input, shape index: {}]   ;;  %s335_s2 = inlined_call_operand.hbm [shape: f32[8,128], index: 2, kind: output, shape index: {}]  }
   0x1   :  { %8 = vsyncpa [#allocation4], 0  ;;  %s281_s9 = smov [#allocation2]   ;;  %s233_s13 = scalar_lea.hbm %s334_s1, 2048 }
   0x2   :  { %s16_s10 = sshll.u32 %s281_s9, 4  ;;  %p234_p0 = scmp.ne.s32.totalorder %s334_s1, %s233_s13  ;;  %s17_s10 = int_to_ptr.vmem [resolvable:$true] %s16_s10 }
   0x3   :  { %p237_p1 = scmp.lt.u32.totalorder %s233_s13, %s334_s1 }
   0x5   :  { %p239_p2 = pnand %p237_p1, %p234_p0 }
   0x7   :  { %242 = shalt.err (!%p239_p2)
}
   0x8   :  { %s243_s18 = scalar_lea.vmem %s17_s10, 2048  ;;  %p248_p4 = scmp.lt.s32.totalorder %s17_s10, %s17_s10 }
   0x9   :  { %p244_p3 = scmp.ne.s32.totalorder %s17_s10, %s243_s18  ;;  %p249_p5 = scmp.lt.s32.totalorder %s243_s18, %s243_s18 }
   0xb   :  { %p250_p6 = por %p249_p5, %p248_p4 }
   0xd   :  { %p251_p7 = pnand %p250_p6, %p244_p3 }
   0xf   :  { %254 = shalt.err (!%p251_p7)
}
  0x10   :  { %s282_s19 = smov 128   ;;  %s283_s20 = smov 8  }
  0x11   :  { %22 = dma.hbm_to_vmem [thread:$0]  %s334_s1, 2048, %s17_s10, [#allocation3], %s282_s19, %s282_s19, %s283_s20  }
  0x12   :  { %277 = dma.done.wait [#allocation3], 2048  }
  0x13   :  { %278 = vsyncadd [#allocation3], 4294965248  ;;  %v284_v0 = vmov 0   ;;  %v285_v1 = vmov 0.0|0.0   ;;  %v26_v2 = vld [vmem:[%s333_s0] sm:$0xff]  ;;  %v42_v4 = vld [vmem:[#allocation2 + $0x8] sm:$0xff]  ;;  %v27_v30 = vlaneseq }
  0x14   :  { %231 = vset.pattern.permute.xlu0 %v284_v0  ;;  %197 = vmatprep.subr.bf16.mxu0 %v285_v1  ;;  %v41_v3 = vld [vmem:[#allocation2] sm:$0xff]  ;;  %v43_v6 = vld [vmem:[#allocation2 + $0x10] sm:$0xff]  ;;  %v44_v7 = vld [vmem:[#allocation2 + $0x18] sm:$0xff]  ;;  %v33_v8 = vadd.s32 11, %v26_v2  ;;  %v286_v12 = vmov 1   ;;  %vm287_vm0 = vmmov 0  }
  0x15   :  { %30 = vperm.xlu0 %231, %v26_v2   ;;  %v198_v5 = vpack.c.bf16 %v42_v4, %v41_v3  ;;  %v201_v9 = vpack.c.bf16 %v44_v7, %v43_v6  ;;  %v45_v10 = vld [vmem:[#allocation2 + $0x20] sm:$0xff]  ;;  %v46_v11 = vld [vmem:[#allocation2 + $0x28] sm:$0xff]  ;;  %v288_v14 = vmov 0.0   ;;  %v47_v15 = vld [vmem:[#allocation2 + $0x30] sm:$0xff]  ;;  %v28_v32 = vand.u32 127, %v27_v30  ;;  %s290_s0 = smov [#allocation5]  }
  0x16   :  { %v204_v13 = vpack.c.bf16 %v46_v11, %v45_v10  ;;  %194 = vmatprep.mubr.msk.f32.mxu0 %vm287_vm0, %v288_v14  ;;  %v48_v16 = vld [vmem:[#allocation2 + $0x38] sm:$0xff]  ;;  %v49_v18 = vld [vmem:[#allocation2 + $0x40] sm:$0xff]  ;;  %v50_v19 = vld [vmem:[#allocation2 + $0x48] sm:$0xff]  ;;  %v289_v34 = vmov 1.0   ;;  %s134_s1 = sshll.u32 %s290_s0, 4  ;;  %s135_s1 = int_to_ptr.vmem [resolvable:$true] %s134_s1 }
  0x17   :  { %199 = vmatpush3.bf16.msra.mxu0 %v198_v5  ;;  %v207_v17 = vpack.c.bf16 %v48_v16, %v47_v15  ;;  %v210_v20 = vpack.c.bf16 %v50_v19, %v49_v18  ;;  %v51_v21 = vld [vmem:[#allocation2 + $0x50] sm:$0xff]  ;;  %v52_v22 = vld [vmem:[#allocation2 + $0x58] sm:$0xff]  ;;  %v53_v24 = vld [vmem:[#allocation2 + $0x60] sm:$0xff]  ;;  %s255_s25 = scalar_lea.vmem %s135_s1, 128  ;;  %p260_p9 = scmp.lt.s32.totalorder %s135_s1, %s135_s1 }
  0x18   :  { %200 = vmatprep.subr.bf16.mxu0 %v285_v1  ;;  %v213_v23 = vpack.c.bf16 %v52_v22, %v51_v21  ;;  %v54_v25 = vld [vmem:[#allocation2 + $0x68] sm:$0xff]  ;;  %v55_v27 = vld [vmem:[#allocation2 + $0x70] sm:$0xff]  ;;  %v56_v28 = vld [vmem:[#allocation2 + $0x78] sm:$0xff]  ;;  %p256_p8 = scmp.ne.s32.totalorder %s135_s1, %s255_s25  ;;  %p261_p10 = scmp.lt.s32.totalorder %s255_s25, %s255_s25 }
  0x19   :  { %232 = vset.pattern.permute.xlu0 %v286_v12  ;;  %v216_v26 = vpack.c.bf16 %v54_v25, %v53_v24  ;;  %v219_v29 = vpack.c.bf16 %v56_v28, %v55_v27 }
  0x1a   :  { %35 = vperm.xlu0 %232, %v33_v8   ;;  %p262_p11 = por %p261_p10, %p260_p9 }
  0x1b   :  { %202 = vmatpush3.bf16.msra.mxu0 %v201_v9 }
  0x1c   :  { %203 = vmatprep.subr.bf16.mxu0 %v285_v1  ;;  %p263_p12 = pnand %p262_p11, %p256_p8 }
  0x1f   :  { %205 = vmatpush3.bf16.msra.mxu0 %v204_v13 }
  0x20   :  { %206 = vmatprep.subr.bf16.mxu0 %v285_v1 }
  0x23   :  { %208 = vmatpush3.bf16.msra.mxu0 %v207_v17 }
  0x24   :  { %209 = vmatprep.subr.bf16.mxu0 %v285_v1 }
  0x27   :  { %211 = vmatpush3.bf16.msra.mxu0 %v210_v20 }
  0x28   :  { %212 = vmatprep.subr.bf16.mxu0 %v285_v1 }
  0x2b   :  { %214 = vmatpush3.bf16.msra.mxu0 %v213_v23 }
  0x2c   :  { %215 = vmatprep.subr.bf16.mxu0 %v285_v1 }
  0x2f   :  { %217 = vmatpush3.bf16.msra.mxu0 %v216_v26 }
  0x30   :  { %218 = vmatprep.subr.bf16.mxu0 %v285_v1 }
  0x33   :  { %220 = vmatpush3.bf16.msra.mxu0 %v219_v29 }
  0x94   :  { %v31_v31 = vpop.permute.xlu0 %30 }
  0x95   :  { %vm32_vm1 = vcmp.eq.s32.totalorder %v28_v32, %v31_v31 }
  0x99   :  { %v36_v33 = vpop.permute.xlu0 %35 }
  0x9a   :  { %vm37_vm2 = vcmp.eq.s32.totalorder %v28_v32, %v36_v33 }
  0x9b   :  { %vm38_vm3 = vmor %vm32_vm1, %vm37_vm2 }
  0x9c   :  { %195 = vmatmul.mubr.msk.f32.vlgmr.msra.gmra.mrb[0].mxu0 %vm38_vm3, %v289_v34 }
 0x16f   :  { %v123_v35 = vpop.f32.mrb[0].mxu0 }
 0x170   :  { %127 = vst [vmem:[#allocation5] sm:$0xff] %v123_v35  ;;  %v196_v36 = vpop.f32.mrb[1].mxu0 }
 0x171   :  { %266 = shalt.err (!%p263_p12)
}
 0x172   :  { %s267_s28 = scalar_lea.hbm %s335_s2, 128 }
 0x173   :  { %p268_p13 = scmp.ne.s32.totalorder %s335_s2, %s267_s28  ;;  %p271_p0 = scmp.lt.u32.totalorder %s267_s28, %s335_s2 }
 0x175   :  { %p273_p1 = pnand %p271_p0, %p268_p13 }
 0x177   :  { %276 = shalt.err (!%p273_p1)
}
 0x178   :  { %137 = dma.vmem_to_hbm [thread:$0]  %s135_s1, 128, %s335_s2, [#allocation4]  }
 0x179   :  { %279 = dma.done.wait [#allocation4], 128  }
 0x17a   :  { %280 = vsyncadd [#allocation4], 4294967168 }
 0x17b   :  { %141 = vsyncpa [#allocation3], 1 }
 0x17c   :  { %142 = vsyncpa [#allocation4], 1 }

</bundles_post_ra>
